<compile_context>
chip_gen: v7x
topology: tpu7x:2x2x1
jax: 0.10.0
libtpu: 0.0.40
codegen_flags: <defaults>
</compile_context>

<pallas_src>
import functools

import jax
import jax.numpy as jnp
from jax.experimental import pallas as pl
from jax.experimental.pallas import tpu as pltpu

_LANES = 128
_SUBLANES = 8


def _attention_kernel(x_ref, mask_ref, vec_ref, wt_ref, b_ref, alphas_ref, prob_ref):
    # x: (TB, T, E)  mask: (TB, T)  vec: (1, E)  wt: (E, NT)  b: (1, NT)
    # E / NT lane-padded (multiples of 128); alphas_ref is (TB, T_pad) lane-dense.
    x = x_ref[...].astype(jnp.float32)
    mask = mask_ref[...].astype(jnp.float32)
    vec = vec_ref[...].astype(jnp.float32)
    wt = wt_ref[...].astype(jnp.float32)
    b = b_ref[...].astype(jnp.float32)

    tb, t, e = x.shape
    nt = wt.shape[1]

    # ---- dot-product attention scores: sims[b,t] = <x[b,t,:], vec> (VPU + lane reduce)
    sims = jnp.sum(x * vec.reshape(1, 1, e), axis=2)                      # (TB, T)

    # ---- AllenNLP masked_softmax: softmax(sims * mask), re-mask, renormalize ----------
    masked = sims * mask
    m = jnp.max(masked, axis=1, keepdims=True)
    ex = jnp.exp(masked - m)
    sm = ex / jnp.sum(ex, axis=1, keepdims=True)
    sm = sm * mask
    alphas = sm / (jnp.sum(sm, axis=1, keepdims=True) + 1e-13)            # (TB, T)

    # ---- lane-dense alphas store: zero the padded lanes, then write the T valid cols --
    if alphas_ref.shape[1] == t:
        alphas_ref[...] = alphas
    else:
        alphas_ref[...] = jnp.zeros(alphas_ref.shape, jnp.float32)
        alphas_ref[:, 0:t] = alphas

    # ---- weighted sum over the sequence on the VPU (avoids TB degenerate M=1 matmuls) -
    ws = jnp.sum(alphas[:, :, None] * x, axis=1)                          # (TB, E)

    # ---- output linear on the MXU (weights pre-transposed in the wrapper) -------------
    scores = jnp.dot(ws, wt, preferred_element_type=jnp.float32) + b      # (TB, NT)

    # ---- argmax over tags (first occurrence, like torch.max) --------------------------
    idx = jax.lax.broadcasted_iota(jnp.int32, scores.shape, 1)
    max_s = jnp.max(scores, axis=1, keepdims=True)
    cand = jnp.where(scores == max_s, idx, nt)
    pred = jnp.min(cand, axis=1, keepdims=True).astype(jnp.float32)       # (TB, 1)

    # ---- softmax over tags; padded cols (bias -1e30) give exp(-huge) == 0 -------------
    es = jnp.exp(scores - max_s)
    sum_es = jnp.sum(es, axis=1, keepdims=True)
    prob = es / sum_es

    # ---- categorical entropy from logits (NaN-safe, no 0*log(0)) ----------------------
    ent = jnp.log(sum_es) - jnp.sum(prob * (scores - max_s), axis=1, keepdims=True)

    # ---- pack pred (f32) / entropy into the last two padded prob lanes (no misc slab) -
    col = jax.lax.broadcasted_iota(jnp.int32, prob.shape, 1)
    prob_ref[...] = jnp.where(col == nt - 2, pred,
                              jnp.where(col == nt - 1, ent, prob))


def _round_up(n, m):
    return (n + m - 1) // m * m


def _pick_batch_tile(b, row_bytes):
    """Batch tile: ~2 MiB of x per pipeline buffer, and >=4 grid steps when B allows."""
    target_bytes = 2 * 1024 * 1024
    tb = (target_bytes // max(row_bytes, 1)) // _SUBLANES * _SUBLANES
    tb = max(_SUBLANES, min(tb, 1024))
    # Keep the grid multi-step so DMA overlaps compute and v7x's 2 TensorCores both work.
    step_cap = max(_SUBLANES, _round_up(pl.cdiv(_round_up(b, _SUBLANES), 4), _SUBLANES))
    tb = min(tb, step_cap)
    return tb, _round_up(b, tb)


@functools.partial(jax.jit, static_argnames=("num_tags",))
def attention_forward(x, mask, vector, w_out, b_out, *, num_tags):
    """x: (B,T,E), mask: (B,T), vector: (E,), w_out: (num_tags,E), b_out: (num_tags,)."""
    B, T, E = x.shape
    E_pad = _round_up(E, _LANES)
    NT_pad = _round_up(num_tags, _LANES)
    if NT_pad - num_tags < 2:            # need 2 spare lanes to pack pred / entropy
        NT_pad += _LANES
    T_pad = _round_up(T, _LANES)         # lane-dense alphas output

    # x keeps its incoming HBM dtype (bf16 upstream halves the dominant DMA traffic);
    # the cast to f32 happens inside the kernel.  Small params cast to f32 once here.
    mask = mask.astype(jnp.float32)
    vector = vector.astype(jnp.float32)
    w_out = w_out.astype(jnp.float32)
    b_out = b_out.astype(jnp.float32)

    # lane-pad the embedding axis (zeros contribute nothing to either contraction)
    if E_pad != E:
        x = jnp.pad(x, ((0, 0), (0, 0), (0, E_pad - E)))
        vector = jnp.pad(vector, (0, E_pad - E))
        w_out = jnp.pad(w_out, ((0, 0), (0, E_pad - E)))
    # lane-pad the tag axis: zero weight rows, -1e30 bias so softmax/argmax ignore them
    if NT_pad != num_tags:
        w_out = jnp.pad(w_out, ((0, NT_pad - num_tags), (0, 0)))
        b_out = jnp.pad(b_out, (0, NT_pad - num_tags), constant_values=-1e30)

    w_t = jnp.transpose(w_out)           # (E_pad, NT_pad): transpose once, outside the kernel
    vec2 = vector.reshape(1, E_pad)
    b2 = b_out.reshape(1, NT_pad)

    x_bytes = jnp.dtype(x.dtype).itemsize
    TB, B_pad = _pick_batch_tile(B, T * E_pad * x_bytes)
    if B_pad != B:   # padded rows have mask==0 -> zero alphas / finite outputs, sliced off
        x = jnp.pad(x, ((0, B_pad - B), (0, 0), (0, 0)))
        mask = jnp.pad(mask, ((0, B_pad - B), (0, 0)))

    grid = (B_pad // TB,)

    # VMEM: double-buffered pipeline blocks + in-kernel f32 temporaries (x cast, x*vec,
    # alphas*x each materialize an x-tile-sized temp) + headroom; hard-capped well below
    # v7x's 64 MiB per-core budget.
    x_tile_in = TB * T * E_pad * x_bytes
    x_tile_f32 = TB * T * E_pad * 4
    pipelined = 2 * (x_tile_in + TB * T * 4 + TB * T_pad * 4 + TB * NT_pad * 4
                     + E_pad * 4 + E_pad * NT_pad * 4 + NT_pad * 4)
    temporaries = 3 * x_tile_f32 + 4 * TB * NT_pad * 4 + 4 * TB * T_pad * 4
    vmem_limit = int(min(max(pipelined + temporaries + (4 << 20), 16 << 20), 40 << 20))

    cost = pl.CostEstimate(
        flops=4 * B_pad * T * E_pad + 2 * B_pad * E_pad * NT_pad,
        transcendentals=B_pad * T + B_pad * NT_pad + B_pad,
        bytes_accessed=(x_bytes * B_pad * T * E_pad
                        + 4 * (B_pad * T + E_pad + E_pad * NT_pad + NT_pad
                               + B_pad * T_pad + B_pad * NT_pad)),
    )

    alphas_full, prob_full = pl.pallas_call(
        _attention_kernel,
        out_shape=(
            jax.ShapeDtypeStruct((B_pad, T_pad), jnp.float32),    # alphas (lane-padded)
            jax.ShapeDtypeStruct((B_pad, NT_pad), jnp.float32),   # prob + [pred, ent] lanes
        ),
        grid=grid,
        in_specs=[
            pl.BlockSpec((TB, T, E_pad), lambda i: (i, 0, 0)),
            pl.BlockSpec((TB, T), lambda i: (i, 0)),
            pl.BlockSpec((1, E_pad), lambda i: (0, 0)),
            pl.BlockSpec((E_pad, NT_pad), lambda i: (0, 0)),
            pl.BlockSpec((1, NT_pad), lambda i: (0, 0)),
        ],
        out_specs=(
            pl.BlockSpec((TB, T_pad), lambda i: (i, 0)),
            pl.BlockSpec((TB, NT_pad), lambda i: (i, 0)),
        ),
        compiler_params=pltpu.CompilerParams(
            dimension_semantics=("parallel",),
            vmem_limit_bytes=vmem_limit,
        ),
        cost_estimate=cost,
    )(x, mask, vec2, w_t, b2)

    alphas = alphas_full[:B, :T]
    prob = prob_full[:B, :num_tags]
    pred = prob_full[:B, NT_pad - 2].astype(jnp.int32)  # TODO(synk): torch.max gives int64
    ent = prob_full[:B, NT_pad - 1]
    loss = jnp.zeros((1,), jnp.float32)                 # y is None -> torch.Tensor([0])
    return alphas, pred, prob, ent, loss


if __name__ == "__main__":
    B, T, E = 2, 8, 32
    NUM_TAGS = 5

    key = jax.random.PRNGKey(0)
    k_x, k_vec, k_w, k_b = jax.random.split(key, 4)

    x = jax.random.normal(k_x, (B, T, E), dtype=jnp.float32)

    # binary padding mask: sample 0 has full length 8, sample 1 has length 5
    lengths = jnp.array([8, 5], dtype=jnp.int32)
    mask = (jnp.arange(T)[None, :] < lengths[:, None]).astype(jnp.float32)

    # deterministic parameter init (stand-ins for torch.nn.init.normal_ / nn.Linear params)
    vector = jax.random.normal(k_vec, (E,), dtype=jnp.float32)
    w_out = jax.random.normal(k_w, (NUM_TAGS, E), dtype=jnp.float32) * 0.1
    b_out = jax.random.normal(k_b, (NUM_TAGS,), dtype=jnp.float32) * 0.1

    alphas, pred, prob, H, loss = attention_forward(
        x, mask, vector, w_out, b_out, num_tags=NUM_TAGS)
    jax.block_until_ready((alphas, pred, prob, H, loss))

    # sanity: shapes, masked positions get zero attention, prob rows sum to 1, finite entropy
    assert alphas.shape == (B, T) and prob.shape == (B, NUM_TAGS)
    assert pred.shape == (B,) and H.shape == (B,) and loss.shape == (1,)
    assert float(jnp.max(jnp.abs(jnp.sum(prob, axis=1) - 1.0))) < 1e-5
    assert float(jnp.max(jnp.abs(jnp.sum(alphas, axis=1) - 1.0))) < 1e-5
    assert float(jnp.max(alphas[1, 5:])) < 1e-6
    assert bool(jnp.all(jnp.isfinite(H))) and bool(jnp.all(jnp.isfinite(alphas)))
    assert bool(jnp.all((pred >= 0) & (pred < NUM_TAGS)))

    print("KERNEL_OK")
</pallas_src>

<mosaic_0001>
module attributes {stable_mosaic.version = 11 : i64} {
  func.func @_attention_kernel(%arg0: i32, %arg1: memref<8x8x128xf32, #tpu.memory_space<vmem>>, %arg2: memref<8x8xf32, #tpu.memory_space<vmem>>, %arg3: memref<1x128xf32, #tpu.memory_space<vmem>>, %arg4: memref<128x128xf32, #tpu.memory_space<vmem>>, %arg5: memref<1x128xf32, #tpu.memory_space<vmem>>, %arg6: memref<8x128xf32, #tpu.memory_space<vmem>>, %arg7: memref<8x128xf32, #tpu.memory_space<vmem>>) attributes {dimension_semantics = [#tpu.dimension_semantics<parallel>], iteration_bounds = array<i64: 1>, scalar_prefetch = 0 : i64, scratch_operands = 0 : i64, tpu.core_type = #tpu.core_type<tc>, window_params = [{transform_indices = @transform_0, window_bounds = array<i64: 8, 8, 128>}, {transform_indices = @transform_1, window_bounds = array<i64: 8, 8>}, {pipeline_mode = #tpu.pipeline_mode<synchronous>, transform_indices = @transform_2, window_bounds = array<i64: 1, 128>}, {pipeline_mode = #tpu.pipeline_mode<synchronous>, transform_indices = @transform_3, window_bounds = array<i64: 128, 128>}, {pipeline_mode = #tpu.pipeline_mode<synchronous>, transform_indices = @transform_4, window_bounds = array<i64: 1, 128>}, {transform_indices = @transform_5, window_bounds = array<i64: 8, 128>}, {transform_indices = @transform_6, window_bounds = array<i64: 8, 128>}]} {
    %c0 = arith.constant 0 : index
    %c0_0 = arith.constant 0 : index
    %c0_1 = arith.constant 0 : index
    %0 = vector.load %arg1[%c0, %c0_0, %c0_1] : memref<8x8x128xf32, #tpu.memory_space<vmem>>, vector<8x8x128xf32>
    %c0_2 = arith.constant 0 : index
    %c0_3 = arith.constant 0 : index
    %1 = vector.load %arg2[%c0_2, %c0_3] : memref<8x8xf32, #tpu.memory_space<vmem>>, vector<8x8xf32>
    %c0_4 = arith.constant 0 : index
    %c0_5 = arith.constant 0 : index
    %2 = vector.load %arg3[%c0_4, %c0_5] : memref<1x128xf32, #tpu.memory_space<vmem>>, vector<1x128xf32>
    %c0_6 = arith.constant 0 : index
    %c0_7 = arith.constant 0 : index
    %3 = vector.load %arg4[%c0_6, %c0_7] : memref<128x128xf32, #tpu.memory_space<vmem>>, vector<128x128xf32>
    %c0_8 = arith.constant 0 : index
    %c0_9 = arith.constant 0 : index
    %4 = vector.load %arg5[%c0_8, %c0_9] : memref<1x128xf32, #tpu.memory_space<vmem>>, vector<1x128xf32>
    %5 = vector.shape_cast %2 : vector<1x128xf32> to vector<1x1x128xf32>
    %6 = vector.broadcast %5 : vector<1x1x128xf32> to vector<8x8x128xf32>
    %7 = arith.mulf %0, %6 : vector<8x8x128xf32>
    %cst = arith.constant dense<0.000000e+00> : vector<8x8xf32>
    %8 = vector.multi_reduction <add>, %7, %cst [2] : vector<8x8x128xf32> to vector<8x8xf32>
    %9 = arith.mulf %8, %1 : vector<8x8xf32>
    %cst_10 = arith.constant dense<0xFF800000> : vector<8xf32>
    %10 = vector.multi_reduction <maximumf>, %9, %cst_10 [1] : vector<8x8xf32> to vector<8xf32>
    %11 = vector.shape_cast %10 : vector<8xf32> to vector<8x1xf32>
    %12 = vector.broadcast %11 : vector<8x1xf32> to vector<8x8xf32>
    %13 = arith.subf %9, %12 : vector<8x8xf32>
    %14 = math.exp %13 : vector<8x8xf32>
    %cst_11 = arith.constant dense<0.000000e+00> : vector<8xf32>
    %15 = vector.multi_reduction <add>, %14, %cst_11 [1] : vector<8x8xf32> to vector<8xf32>
    %16 = vector.shape_cast %15 : vector<8xf32> to vector<8x1xf32>
    %17 = vector.broadcast %16 : vector<8x1xf32> to vector<8x8xf32>
    %18 = arith.divf %14, %17 : vector<8x8xf32>
    %19 = arith.mulf %18, %1 : vector<8x8xf32>
    %cst_12 = arith.constant dense<0.000000e+00> : vector<8xf32>
    %20 = vector.multi_reduction <add>, %19, %cst_12 [1] : vector<8x8xf32> to vector<8xf32>
    %21 = vector.shape_cast %20 : vector<8xf32> to vector<8x1xf32>
    %cst_13 = arith.constant 9.99999982E-14 : f32
    %22 = vector.broadcast %cst_13 : f32 to vector<8x1xf32>
    %23 = arith.addf %21, %22 : vector<8x1xf32>
    %24 = vector.broadcast %23 : vector<8x1xf32> to vector<8x8xf32>
    %25 = arith.divf %19, %24 : vector<8x8xf32>
    %cst_14 = arith.constant 0.000000e+00 : f32
    %26 = vector.broadcast %cst_14 : f32 to vector<8x128xf32>
    %c0_15 = arith.constant 0 : index
    %c0_16 = arith.constant 0 : index
    %27 = vector.load %arg6[%c0_15, %c0_16] : memref<8x128xf32, #tpu.memory_space<vmem>>, vector<8x128xf32>
    tpu.vector_store %arg6[%c0_15, %c0_16], %26 {strides = array<i32>} : memref<8x128xf32, #tpu.memory_space<vmem>>, vector<8x128xf32>,
    %c0_17 = arith.constant 0 : index
    %c0_18 = arith.constant 0 : index
    %28 = vector.load %arg6[%c0_17, %c0_18] : memref<8x128xf32, #tpu.memory_space<vmem>>, vector<8x8xf32>
    tpu.vector_store %arg6[%c0_17, %c0_18], %25 {strides = array<i32>} : memref<8x128xf32, #tpu.memory_space<vmem>>, vector<8x8xf32>,
    %29 = vector.shape_cast %25 : vector<8x8xf32> to vector<8x8x1xf32>
    %30 = vector.broadcast %29 : vector<8x8x1xf32> to vector<8x8x128xf32>
    %31 = arith.mulf %30, %0 : vector<8x8x128xf32>
    %cst_19 = arith.constant dense<0.000000e+00> : vector<8x128xf32>
    %32 = vector.multi_reduction <add>, %31, %cst_19 [1] : vector<8x8x128xf32> to vector<8x128xf32>
    %cst_20 = arith.constant dense<0.000000e+00> : vector<8x128xf32>
    %33 = tpu.matmul %32, %3, %cst_20 {dimension_numbers = #tpu.dot_dimension_numbers<[1], [0], [0], [1], [0, 0, 1, 1], [], []>} : vector<8x128xf32>, vector<128x128xf32>, vector<8x128xf32> -> vector<8x128xf32>
    %34 = vector.broadcast %4 : vector<1x128xf32> to vector<8x128xf32>
    %35 = arith.addf %33, %34 : vector<8x128xf32>
    %36 = tpu.iota {dimensions = array<i32: 1>} : vector<8x128xi32>
    %cst_21 = arith.constant dense<0xFF800000> : vector<8xf32>
    %37 = vector.multi_reduction <maximumf>, %35, %cst_21 [1] : vector<8x128xf32> to vector<8xf32>
    %38 = vector.shape_cast %37 : vector<8xf32> to vector<8x1xf32>
    %39 = vector.broadcast %38 : vector<8x1xf32> to vector<8x128xf32>
    %40 = arith.cmpf oeq, %35, %39 : vector<8x128xf32>
    %c128_i32 = arith.constant 128 : i32
    %41 = vector.broadcast %c128_i32 : i32 to vector<8x128xi32>
    %42 = arith.select %40, %36, %41 : vector<8x128xi1>, vector<8x128xi32>
    %cst_22 = arith.constant dense<2147483647> : vector<8xi32>
    %43 = vector.multi_reduction <minsi>, %42, %cst_22 [1] : vector<8x128xi32> to vector<8xi32>
    %44 = vector.shape_cast %43 : vector<8xi32> to vector<8x1xi32>
    %45 = arith.sitofp %44 : vector<8x1xi32> to vector<8x1xf32>
    %46 = vector.broadcast %38 : vector<8x1xf32> to vector<8x128xf32>
    %47 = arith.subf %35, %46 : vector<8x128xf32>
    %48 = math.exp %47 : vector<8x128xf32>
    %cst_23 = arith.constant dense<0.000000e+00> : vector<8xf32>
    %49 = vector.multi_reduction <add>, %48, %cst_23 [1] : vector<8x128xf32> to vector<8xf32>
    %50 = vector.shape_cast %49 : vector<8xf32> to vector<8x1xf32>
    %51 = vector.broadcast %50 : vector<8x1xf32> to vector<8x128xf32>
    %52 = arith.divf %48, %51 : vector<8x128xf32>
    %53 = math.log %50 : vector<8x1xf32>
    %54 = vector.broadcast %38 : vector<8x1xf32> to vector<8x128xf32>
    %55 = arith.subf %35, %54 : vector<8x128xf32>
    %56 = arith.mulf %52, %55 : vector<8x128xf32>
    %cst_24 = arith.constant dense<0.000000e+00> : vector<8xf32>
    %57 = vector.multi_reduction <add>, %56, %cst_24 [1] : vector<8x128xf32> to vector<8xf32>
    %58 = vector.shape_cast %57 : vector<8xf32> to vector<8x1xf32>
    %59 = arith.subf %53, %58 : vector<8x1xf32>
    %60 = tpu.iota {dimensions = array<i32: 1>} : vector<8x128xi32>
    %c126_i32 = arith.constant 126 : i32
    %61 = vector.broadcast %c126_i32 : i32 to vector<8x128xi32>
    %62 = arith.cmpi eq, %60, %61 : vector<8x128xi32>
    %c127_i32 = arith.constant 127 : i32
    %63 = vector.broadcast %c127_i32 : i32 to vector<8x128xi32>
    %64 = arith.cmpi eq, %60, %63 : vector<8x128xi32>
    %65 = vector.shape_cast %59 : vector<8x1xf32> to vector<8x1xf32>
    %66 = vector.broadcast %65 : vector<8x1xf32> to vector<8x128xf32>
    %67 = arith.select %64, %66, %52 : vector<8x128xi1>, vector<8x128xf32>
    %68 = vector.shape_cast %45 : vector<8x1xf32> to vector<8x1xf32>
    %69 = vector.broadcast %68 : vector<8x1xf32> to vector<8x128xf32>
    %70 = arith.select %62, %69, %67 : vector<8x128xi1>, vector<8x128xf32>
    %c0_25 = arith.constant 0 : index
    %c0_26 = arith.constant 0 : index
    %71 = vector.load %arg7[%c0_25, %c0_26] : memref<8x128xf32, #tpu.memory_space<vmem>>, vector<8x128xf32>
    tpu.vector_store %arg7[%c0_25, %c0_26], %70 {strides = array<i32>} : memref<8x128xf32, #tpu.memory_space<vmem>>, vector<8x128xf32>,
    return
  }
  func.func @transform_0(%arg0: i32) -> (i32, i32, i32) {
    %c0_i32 = arith.constant 0 : i32
    %c0_i32_0 = arith.constant 0 : i32
    %c0_i32_1 = arith.constant 0 : i32
    return %arg0, %c0_i32, %c0_i32_0 : i32, i32, i32
  }
  func.func @transform_1(%arg0: i32) -> (i32, i32) {
    %c0_i32 = arith.constant 0 : i32
    %c0_i32_0 = arith.constant 0 : i32
    return %arg0, %c0_i32 : i32, i32
  }
  func.func @transform_2(%arg0: i32) -> (i32, i32) {
    %c0_i32 = arith.constant 0 : i32
    %c0_i32_0 = arith.constant 0 : i32
    %c0_i32_1 = arith.constant 0 : i32
    return %c0_i32, %c0_i32_0 : i32, i32
  }
  func.func @transform_3(%arg0: i32) -> (i32, i32) {
    %c0_i32 = arith.constant 0 : i32
    %c0_i32_0 = arith.constant 0 : i32
    %c0_i32_1 = arith.constant 0 : i32
    return %c0_i32, %c0_i32_0 : i32, i32
  }
  func.func @transform_4(%arg0: i32) -> (i32, i32) {
    %c0_i32 = arith.constant 0 : i32
    %c0_i32_0 = arith.constant 0 : i32
    %c0_i32_1 = arith.constant 0 : i32
    return %c0_i32, %c0_i32_0 : i32, i32
  }
  func.func @transform_5(%arg0: i32) -> (i32, i32) {
    %c0_i32 = arith.constant 0 : i32
    %c0_i32_0 = arith.constant 0 : i32
    return %arg0, %c0_i32 : i32, i32
  }
  func.func @transform_6(%arg0: i32) -> (i32, i32) {
    %c0_i32 = arith.constant 0 : i32
    %c0_i32_0 = arith.constant 0 : i32
    return %arg0, %c0_i32 : i32, i32
  }
}

</mosaic_0001>

<bundles_post_ra>
// kernel: attention_forward.1
= control target key start
LH: loop header
LB: loop body
LE: loop exit
PB: predicated region body
PF: predicated region fallthrough
CT: control target
= control target key end

     0   :  { %v80_v17 = vlaneseq  ;;  %v988_v28 = vmov 0   ;;  %vm218_vm0 = vcmask 1041409   ;;  %vm220_vm1 = vcmask 1042434   ;;  %s1391_s0 = inlined_call_operand.vmem [shape: f32[8,8,128], index: 0, kind: input, shape index: {}]   ;;  %s1392_s2 = inlined_call_operand.vmem [shape: f32[1,128], index: 2, kind: input, shape index: {}]   ;;  %s1393_s1 = inlined_call_operand.vmem [shape: f32[8,8], index: 1, kind: input, shape index: {}]   ;;  %s1394_s3 = inlined_call_operand.vmem [shape: f32[128,128], index: 3, kind: input, shape index: {}]   ;;  %s1395_s5 = inlined_call_operand.vmem [shape: f32[8,128], index: 5, kind: output, shape index: {0}]   ;;  %s1396_s4 = inlined_call_operand.vmem [shape: f32[1,128], index: 4, kind: input, shape index: {}]   ;;  %s1397_s6 = inlined_call_operand.vmem [shape: f32[8,128], index: 6, kind: output, shape index: {1}]  }
   0x1   :  { %v1030_v0 = vld [vmem:[%s1391_s0 + $0x10] sm:$0xff]  ;;  %v850_v1 = vld [vmem:[%s1392_s2] ss:$0 sm:$0xff]  ;;  %v1045_v5 = vld [vmem:[%s1391_s0 + $0x18] sm:$0xff]  ;;  %933 = vset.pattern.permute.xlu1 %v988_v28  ;;  %932 = vset.pattern.permute.xlu0 %v988_v28  ;;  %vm222_vm2 = vcmask 1043459   ;;  %vm224_vm3 = vcmask 1044484  }
   0x2   :  { %v1038_v2 = vld [vmem:[%s1391_s0] sm:$0xff]  ;;  %v57_v3 = vmul.f32 %v850_v1, %v1030_v0  ;;  %v1050_v6 = vld [vmem:[%s1391_s0 + $0x8] sm:$0xff]  ;;  %v58_v7 = vmul.f32 %v850_v1, %v1045_v5  ;;  %v1069_v13 = vld [vmem:[%s1391_s0 + $0x38] sm:$0xff]  ;;  %v1078_v18 = vshrl.u32 %v80_v17, 7  ;;  %v1151_v61 = vand.u32 127, %v80_v17 }
   0x3   :  { %v55_v4 = vmul.f32 %v850_v1, %v1038_v2  ;;  %v56_v8 = vmul.f32 %v850_v1, %v1050_v6  ;;  %v1057_v9 = vld [vmem:[%s1391_s0 + $0x28] sm:$0xff]  ;;  %v1062_v10 = vld [vmem:[%s1391_s0 + $0x20] sm:$0xff]  ;;  %v1074_v14 = vld [vmem:[%s1391_s0 + $0x30] sm:$0xff]  ;;  %v62_v15 = vmul.f32 %v850_v1, %v1069_v13  ;;  %vm226_vm4 = vcmask 1045509  }
   0x4   :  { %67 = vadd.xlane.f32.xlu1 %v57_v3  ;;  %v60_v11 = vmul.f32 %v850_v1, %v1057_v9  ;;  %v59_v12 = vmul.f32 %v850_v1, %v1062_v10  ;;  %v61_v16 = vmul.f32 %v850_v1, %v1074_v14  ;;  %v1081_v19 = vsub.s32 1, %v1078_v18  ;;  %v30_v20 = vld [vmem:[%s1393_s1] sm:$0xff] }
   0x5   :  { %63 = vadd.xlane.f32.xlu0 %v55_v4  ;;  %v1088_v22 = vsub.s32 2, %v1078_v18  ;;  %v1091_v23 = vsub.s32 0, %v1078_v18  ;;  %v1095_v25 = vsub.s32 3, %v1078_v18  ;;  %v1099_v27 = vsub.s32 4, %v1078_v18 }
   0x6   :  { %v90_v21 = vrot.slane %v30_v20, %v1081_v19  ;;  %v1103_v30 = vsub.s32 5, %v1078_v18  ;;  %v1107_v32 = vsub.s32 6, %v1078_v18  ;;  %v1111_v34 = vsub.s32 7, %v1078_v18 }
   0x7   :  { %v97_v24 = vrot.slane %v30_v20, %v1088_v22  ;;  %v83_v26 = vrot.slane %v30_v20, %v1091_v23  ;;  %v104_v29 = vrot.slane %v30_v20, %v1095_v25  ;;  %v111_v31 = vrot.slane %v30_v20, %v1099_v27 }
   0x8   :  { %69 = vadd.xlane.f32.xlu1 %v58_v7  ;;  %v118_v33 = vrot.slane %v30_v20, %v1103_v30  ;;  %v125_v35 = vrot.slane %v30_v20, %v1107_v32  ;;  %v132_v36 = vrot.slane %v30_v20, %v1111_v34  ;;  %v1155_v63 = vsub.s32 %v1151_v61, %v1078_v18 }
   0x9   :  { %65 = vadd.xlane.f32.xlu0 %v56_v8  ;;  %vm228_vm5 = vcmask 1046534   ;;  %vm230_vm6 = vcmask 1047559   ;;  %vm233_vm7 = vcmask 64512   ;;  %vm991_vm8 = vmmov 0  }
   0xa   :  { %vm838_vm11 = vcmp.eq.s32.totalorder %v1151_v61, 127  ;;  %vm837_vm12 = vcmp.eq.s32.totalorder %v1151_v61, 126 }
   0xc   :  { %73 = vadd.xlane.f32.xlu1 %v60_v11 }
   0xd   :  { %71 = vadd.xlane.f32.xlu0 %v59_v12 }
  0x10   :  { %77 = vadd.xlane.f32.xlu1 %v62_v15 }
  0x11   :  { %75 = vadd.xlane.f32.xlu0 %v61_v16 }
  0x21   :  { %92 = vbcast.lane.b32.xlu1 %v90_v21, 256 }
  0x25   :  { %99 = vbcast.lane.b32.xlu1 %v97_v24, 256 }
  0x27   :  { %85 = vbcast.lane.b32.xlu0 %v83_v26, 256 }
  0x29   :  { %106 = vbcast.lane.b32.xlu1 %v104_v29, 256 }
  0x2b   :  { %113 = vbcast.lane.b32.xlu0 %v111_v31, 256 }
  0x2d   :  { %120 = vbcast.lane.b32.xlu1 %v118_v33, 256 }
  0x2f   :  { %127 = vbcast.lane.b32.xlu0 %v125_v35, 256 }
  0x31   :  { %134 = vbcast.lane.b32.xlu1 %v132_v36, 256 }
  0x91   :  { %v68_v37 = vpop.xlane.xlu1 %67 }
  0x92   :  { %v64_v38 = vpop.xlane.xlu0 %63 }
  0x95   :  { %v70_v39 = vpop.xlane.xlu1 %69 }
  0x96   :  { %v66_v40 = vpop.xlane.xlu0 %65 }
  0x99   :  { %v74_v41 = vpop.xlane.xlu1 %73 }
  0x9a   :  { %v72_v42 = vpop.xlane.xlu0 %71 }
  0x9d   :  { %v78_v43 = vpop.xlane.xlu1 %77 }
  0x9e   :  { %v76_v44 = vpop.xlane.xlu0 %75 }
  0xa1   :  { %v1115_v45 = vpop.permute.xlu1 %92 }
  0xa2   :  { %v1117_v46 = vpop.permute.xlu0 %85  ;;  %v145_v47 = vmul.f32 %v1115_v45, %v66_v40 }
  0xa3   :  { %v144_v48 = vmul.f32 %v1117_v46, %v64_v38 }
  0xa4   :  { %164 = vperm.xlu1 %933, %v145_v47  }
  0xa5   :  { %161 = vperm.xlu0 %932, %v144_v48   ;;  %v1121_v49 = vpop.permute.xlu1 %99 }
  0xa6   :  { %v1123_v50 = vpop.permute.xlu0 %113  ;;  %v146_v51 = vmul.f32 %v1121_v49, %v68_v37 }
  0xa7   :  { %v1129_v53 = vmul.f32 %v1123_v50, %v72_v42 }
  0xa8   :  { %167 = vperm.xlu1 %933, %v146_v51  }
  0xa9   :  { %v1126_v52 = vpop.permute.xlu1 %106 }
  0xaa   :  { %v147_v54 = vmul.f32 %v1126_v52, %v70_v39  ;;  %v1132_v55 = vpop.permute.xlu0 %127 }
  0xab   :  { %v1138_v57 = vmul.f32 %v1132_v55, %v76_v44 }
  0xac   :  { %170 = vperm.xlu0 %932, %v147_v54   ;;  %173 = vperm.xlu1 %933, %v1129_v53  }
  0xad   :  { %v1135_v56 = vpop.permute.xlu1 %120 }
  0xae   :  { %v1141_v58 = vmul.f32 %v1135_v56, %v74_v41 }
  0xb0   :  { %176 = vperm.xlu0 %932, %v1141_v58   ;;  %179 = vperm.xlu1 %933, %v1138_v57  }
  0xb1   :  { %v1145_v59 = vpop.permute.xlu1 %134 }
  0xb2   :  { %v1148_v60 = vmul.f32 %v1145_v59, %v78_v43 }
  0xb4   :  { %182 = vperm.xlu0 %932, %v1148_v60  }
 0x123   :  { %v165_v62 = vpop.permute.xlu1 %164 }
 0x124   :  { %v162_v1 = vpop.permute.xlu0 %161  ;;  %v193_v4 = vrot.slane %v165_v62, %v1155_v63 }
 0x125   :  { %v189_v7 = vrot.slane %v162_v1, %v1155_v63 }
 0x127   :  { %v168_v3 = vpop.permute.xlu1 %167  ;;  %v219_v15 = vsel %vm218_vm0, %v193_v4, %v189_v7 }
 0x128   :  { %v197_v8 = vrot.slane %v168_v3, %v1155_v63 }
 0x12a   :  { %v221_v17 = vsel %vm220_vm1, %v197_v8, %v219_v15 }
 0x12b   :  { %v174_v11 = vpop.permute.xlu1 %173  ;;  %v171_v12 = vpop.permute.xlu0 %170 }
 0x12c   :  { %v201_v16 = vrot.slane %v171_v12, %v1155_v63  ;;  %v205_v18 = vrot.slane %v174_v11, %v1155_v63 }
 0x12e   :  { %v223_v20 = vsel %vm222_vm2, %v201_v16, %v221_v17 }
 0x12f   :  { %v180_v21 = vpop.permute.xlu1 %179  ;;  %v177_v24 = vpop.permute.xlu0 %176  ;;  %v225_v29 = vsel %vm224_vm3, %v205_v18, %v223_v20 }
 0x130   :  { %v209_v26 = vrot.slane %v177_v24, %v1155_v63  ;;  %v213_v28 = vrot.slane %v180_v21, %v1155_v63 }
 0x132   :  { %v227_v31 = vsel %vm226_vm4, %v209_v26, %v225_v29 }
 0x133   :  { %v183_v33 = vpop.permute.xlu0 %182  ;;  %v229_v36 = vsel %vm228_vm5, %v213_v28, %v227_v31 }
 0x134   :  { %v217_v35 = vrot.slane %v183_v33, %v1155_v63 }
 0x136   :  { %v231_v37 = vsel %vm230_vm6, %v217_v35, %v229_v36 }
 0x137   :  { %v234_v38 = vsel %vm233_vm7, %v231_v37, -inf }
 0x138   :  { %235 = vmax.xlane.f32.xlu1 %v234_v38 }
 0x1c5   :  { %v236_v39 = vpop.xlane.xlu1 %235 }
 0x1c6   :  { %v241_v40 = vrot.slane %v236_v39, %v1091_v23  ;;  %v245_v41 = vrot.slane %v236_v39, %v1081_v19  ;;  %v249_v42 = vrot.slane %v236_v39, %v1088_v22  ;;  %v253_v1 = vrot.slane %v236_v39, %v1095_v25 }
 0x1c7   :  { %v257_v7 = vrot.slane %v236_v39, %v1099_v27  ;;  %v261_v12 = vrot.slane %v236_v39, %v1103_v30 }
 0x1c8   :  { %v278_v43 = vsub.f32 %v144_v48, %v241_v40  ;;  %v279_v44 = vsub.f32 %v145_v47, %v245_v41  ;;  %v280_v3 = vsub.f32 %v146_v51, %v249_v42  ;;  %v281_v8 = vsub.f32 %v147_v54, %v253_v1 }
 0x1c9   :  { %v282_v15 = vsub.f32 %v1129_v53, %v257_v7  ;;  %v265_v47 = vrot.slane %v236_v39, %v1107_v32  ;;  %v283_v48 = vsub.f32 %v1141_v58, %v261_v12  ;;  %v269_v54 = vrot.slane %v236_v39, %v1111_v34 }
 0x1ca   :  { %v286_v62 = vmul.f32 1.442695, %v278_v43  ;;  %v288_v4 = vmul.f32 1.442695, %v279_v44  ;;  %v290_v11 = vmul.f32 1.442695, %v280_v3 }
 0x1cb   :  { %v292_v16 = vmul.f32 1.442695, %v281_v8  ;;  %v294_v51 = vmul.f32 1.442695, %v282_v15  ;;  %v284_v53 = vsub.f32 %v1138_v57, %v265_v47  ;;  %v296_v20 = vmul.f32 1.442695, %v283_v48 }
 0x1cc   :  { %934 = vpow2.f32 %v286_v62  ;;  %v285_v24 = vsub.f32 %v1148_v60, %v269_v54 }
 0x1cd   :  { %936 = vpow2.f32 %v288_v4  ;;  %v298_v58 = vmul.f32 1.442695, %v284_v53 }
 0x1ce   :  { %938 = vpow2.f32 %v290_v11  ;;  %v300_v28 = vmul.f32 1.442695, %v285_v24 }
 0x1cf   :  { %940 = vpow2.f32 %v292_v16 }
 0x1d0   :  { %942 = vpow2.f32 %v294_v51 }
 0x1d1   :  { %944 = vpow2.f32 %v296_v20 }
 0x1d2   :  { %946 = vpow2.f32 %v298_v58 }
 0x1d3   :  { %948 = vpow2.f32 %v300_v28 }
 0x1d6   :  { %v1180_v17 = vpop.eup %934 }
 0x1d7   :  { %311 = vperm.xlu0 %932, %v1180_v17   ;;  %v1185_v18 = vpop.eup %936 }
 0x1d8   :  { %v1190_v21 = vpop.eup %938 }
 0x1d9   :  { %v1194_v26 = vpop.eup %940 }
 0x1da   :  { %v943_v29 = vpop.eup %942 }
 0x1db   :  { %314 = vperm.xlu0 %932, %v1185_v18   ;;  %v1197_v57 = vpop.eup %944 }
 0x1dc   :  { %v1200_v31 = vpop.eup %946 }
 0x1dd   :  { %v1203_v60 = vpop.eup %948 }
 0x1df   :  { %317 = vperm.xlu0 %932, %v1190_v21  }
 0x1e3   :  { %320 = vperm.xlu0 %932, %v1194_v26  }
 0x1e7   :  { %323 = vperm.xlu0 %932, %v943_v29  }
 0x1eb   :  { %326 = vperm.xlu0 %932, %v1197_v57  }
 0x1ef   :  { %329 = vperm.xlu0 %932, %v1200_v31  }
 0x1f3   :  { %332 = vperm.xlu0 %932, %v1203_v60  }
 0x256   :  { %v312_v33 = vpop.permute.xlu0 %311 }
 0x257   :  { %v337_v42 = vrot.slane %v312_v33, %v1155_v63 }
 0x25a   :  { %v315_v35 = vpop.permute.xlu0 %314 }
 0x25b   :  { %v341_v40 = vrot.slane %v315_v35, %v1155_v63 }
 0x25d   :  { %v366_v1 = vsel %vm218_vm0, %v341_v40, %v337_v42 }
 0x25e   :  { %v318_v36 = vpop.permute.xlu0 %317 }
 0x25f   :  { %v345_v41 = vrot.slane %v318_v36, %v1155_v63 }
 0x261   :  { %v367_v4 = vsel %vm220_vm1, %v345_v41, %v366_v1 }
 0x262   :  { %v321_v37 = vpop.permute.xlu0 %320 }
 0x263   :  { %v349_v43 = vrot.slane %v321_v37, %v1155_v63 }
 0x265   :  { %v368_v8 = vsel %vm222_vm2, %v349_v43, %v367_v4 }
 0x266   :  { %v324_v38 = vpop.permute.xlu0 %323 }
 0x267   :  { %v353_v44 = vrot.slane %v324_v38, %v1155_v63 }
 0x269   :  { %v369_v11 = vsel %vm224_vm3, %v353_v44, %v368_v8 }
 0x26a   :  { %v327_v39 = vpop.permute.xlu0 %326 }
 0x26b   :  { %v357_v3 = vrot.slane %v327_v39, %v1155_v63 }
 0x26d   :  { %v370_v15 = vsel %vm226_vm4, %v357_v3, %v369_v11 }
 0x26e   :  { %v330_v62 = vpop.permute.xlu0 %329 }
 0x26f   :  { %v361_v7 = vrot.slane %v330_v62, %v1155_v63 }
 0x271   :  { %v371_v47 = vsel %vm228_vm5, %v361_v7, %v370_v15 }
 0x272   :  { %v333_v12 = vpop.permute.xlu0 %332 }
 0x273   :  { %v365_v16 = vrot.slane %v333_v12, %v1155_v63 }
 0x275   :  { %v372_v48 = vsel %vm230_vm6, %v365_v16, %v371_v47 }
 0x276   :  { %v374_v51 = vsel %vm233_vm7, %v372_v48, 0.0 }
 0x277   :  { %375 = vadd.xlane.f32.xlu0 %v374_v51 }
 0x304   :  { %v376_v54 = vpop.xlane.xlu0 %375 }
 0x305   :  { %v397_v53 = vrot.slane %v376_v54, %v1099_v27  ;;  %v381_v20 = vrot.slane %v376_v54, %v1091_v23  ;;  %v385_v24 = vrot.slane %v376_v54, %v1081_v19  ;;  %v389_v58 = vrot.slane %v376_v54, %v1088_v22 }
 0x306   :  { %v393_v28 = vrot.slane %v376_v54, %v1095_v25  ;;  %v401_v33 = vrot.slane %v376_v54, %v1103_v30  ;;  %v405_v41 = vrot.slane %v376_v54, %v1107_v32 }
 0x307   :  { %950 = vrcp.f32 %v397_v53 }
 0x308   :  { %952 = vrcp.f32 %v381_v20 }
 0x309   :  { %954 = vrcp.f32 %v385_v24 }
 0x30a   :  { %956 = vrcp.f32 %v389_v58 }
 0x30b   :  { %958 = vrcp.f32 %v393_v28 }
 0x30c   :  { %960 = vrcp.f32 %v401_v33 }
 0x30d   :  { %962 = vrcp.f32 %v405_v41 }
 0x311   :  { %v951_v35 = vpop.eup %950 }
 0x312   :  { %v953_v36 = vpop.eup %952  ;;  %v427_v37 = vmul.f32 %v951_v35, %v943_v29  ;;  %v409_v29 = vrot.slane %v376_v54, %v1111_v34 }
 0x313   :  { %v955_v38 = vpop.eup %954  ;;  %v419_v39 = vmul.f32 %v953_v36, %v1180_v17 }
 0x314   :  { %v1230_v40 = vmul.f32 %v427_v37, %v1123_v50  ;;  %v421_v43 = vmul.f32 %v955_v38, %v1185_v18  ;;  %v957_v44 = vpop.eup %956  ;;  %964 = vrcp.f32 %v409_v29 }
 0x315   :  { %v1234_v42 = vmul.f32 %v419_v39, %v1117_v46  ;;  %v423_v50 = vmul.f32 %v957_v44, %v1190_v21  ;;  %v959_v62 = vpop.eup %958 }
 0x316   :  { %463 = vperm.xlu0 %932, %v1230_v40   ;;  %v1241_v17 = vmul.f32 %v421_v43, %v1115_v45  ;;  %v425_v18 = vmul.f32 %v959_v62, %v1194_v26  ;;  %v961_v1 = vpop.eup %960 }
 0x317   :  { %451 = vperm.xlu1 %933, %v1234_v42   ;;  %v1246_v46 = vmul.f32 %v423_v50, %v1121_v49  ;;  %v429_v45 = vmul.f32 %v961_v1, %v1197_v57  ;;  %v963_v4 = vpop.eup %962 }
 0x318   :  { %v1251_v3 = vmul.f32 %v425_v18, %v1126_v52  ;;  %v431_v7 = vmul.f32 %v963_v4, %v1200_v31 }
 0x319   :  { %v1256_v21 = vmul.f32 %v429_v45, %v1135_v56 }
 0x31a   :  { %v1261_v26 = vmul.f32 %v431_v7, %v1132_v55 }
 0x31b   :  { %454 = vperm.xlu1 %933, %v1241_v17  }
 0x31e   :  { %v965_v49 = vpop.eup %964 }
 0x31f   :  { %457 = vperm.xlu1 %933, %v1246_v46   ;;  %v433_v8 = vmul.f32 %v965_v49, %v1203_v60 }
 0x321   :  { %v441_v52 = vmul.f32 %v433_v8, %v1145_v59 }
 0x323   :  { %460 = vperm.xlu1 %933, %v1251_v3  }
 0x327   :  { %466 = vperm.xlu1 %933, %v1256_v21  }
 0x32b   :  { %469 = vperm.xlu1 %933, %v1261_v26  }
 0x32f   :  { %472 = vperm.xlu1 %933, %v441_v52  }
 0x395   :  { %v464_v48 = vpop.permute.xlu0 %463 }
 0x396   :  { %v452_v57 = vpop.permute.xlu1 %451  ;;  %v493_v20 = vrot.slane %v464_v48, %v1155_v63 }
 0x397   :  { %v477_v47 = vrot.slane %v452_v57, %v1155_v63  ;;  %v989_v57 = vmov 0.0|0.0  }
 0x398   :  { %904 = vmatprep.subr.bf16.mxu0 %v989_v57 }
 0x39a   :  { %v455_v11 = vpop.permute.xlu1 %454 }
 0x39b   :  { %v481_v15 = vrot.slane %v455_v11, %v1155_v63  ;;  %v35_v11 = vld [vmem:[%s1394_s3 + $0x18] sm:$0xff] }
 0x39d   :  { %v506_v60 = vsel %vm218_vm0, %v481_v15, %v477_v47 }
 0x39e   :  { %v458_v12 = vpop.permute.xlu1 %457 }
 0x39f   :  { %v485_v31 = vrot.slane %v458_v12, %v1155_v63 }
 0x3a1   :  { %v507_v51 = vsel %vm220_vm1, %v485_v31, %v506_v60  ;;  %v37_v31 = vld [vmem:[%s1394_s3 + $0x28] sm:$0xff]  ;;  %v40_v60 = vld [vmem:[%s1394_s3 + $0x40] sm:$0xff] }
 0x3a2   :  { %v461_v56 = vpop.permute.xlu1 %460 }
 0x3a3   :  { %v489_v55 = vrot.slane %v461_v56, %v1155_v63 }
 0x3a5   :  { %v508_v54 = vsel %vm222_vm2, %v489_v55, %v507_v51  ;;  %v39_v55 = vld [vmem:[%s1394_s3 + $0x38] sm:$0xff] }
 0x3a6   :  { %v467_v16 = vpop.permute.xlu1 %466  ;;  %v509_v58 = vsel %vm224_vm3, %v493_v20, %v508_v54  ;;  %v43_v54 = vld [vmem:[%s1394_s3 + $0x58] sm:$0xff]  ;;  %v990_v20 = vmov 0.0  }
 0x3a7   :  { %v497_v53 = vrot.slane %v467_v16, %v1155_v63  ;;  %575 = vst [vmem:[%s1395_s5] sm:$0xff] %v990_v20  ;;  %901 = vmatprep.mubr.msk.f32.mxu0 %vm991_vm8, %v990_v20 }
 0x3a9   :  { %v510_v33 = vsel %vm226_vm4, %v497_v53, %v509_v58  ;;  %v45_v58 = vld [vmem:[%s1394_s3 + $0x68] sm:$0xff] }
 0x3aa   :  { %v470_v59 = vpop.permute.xlu1 %469 }
 0x3ab   :  { %v501_v24 = vrot.slane %v470_v59, %v1155_v63  ;;  %v42_v59 = vld [vmem:[%s1394_s3 + $0x50] sm:$0xff] }
 0x3ac   :  { %v920_v53 = vpack.c.bf16 %v43_v54, %v42_v59 }
 0x3ad   :  { %v511_v36 = vsel %vm228_vm5, %v501_v24, %v510_v33  ;;  %v44_v24 = vld [vmem:[%s1394_s3 + $0x60] sm:$0xff] }
 0x3ae   :  { %v473_v28 = vpop.permute.xlu1 %472  ;;  %v923_v33 = vpack.c.bf16 %v45_v58, %v44_v24 }
 0x3af   :  { %v505_v35 = vrot.slane %v473_v28, %v1155_v63  ;;  %v46_v28 = vld [vmem:[%s1394_s3 + $0x70] sm:$0xff] }
 0x3b1   :  { %v512_v37 = vsel %vm230_vm6, %v505_v35, %v511_v36  ;;  %v47_v35 = vld [vmem:[%s1394_s3 + $0x78] sm:$0xff] }
 0x3b2   :  { %v514_v38 = vsel %vm233_vm7, %v512_v37, 0.0  ;;  %v926_v36 = vpack.c.bf16 %v47_v35, %v46_v28 }
 0x3b3   :  { %515 = vadd.xlane.f32.xlu1 %v514_v38 }
 0x440   :  { %v516_v39 = vpop.xlane.xlu1 %515 }
 0x441   :  { %v517_v41 = vadd.f32 1e-13, %v516_v39 }
 0x443   :  { %v550_v43 = vrot.slane %v517_v41, %v1111_v34  ;;  %v522_v44 = vrot.slane %v517_v41, %v1091_v23  ;;  %v526_v29 = vrot.slane %v517_v41, %v1081_v19  ;;  %v530_v50 = vrot.slane %v517_v41, %v1088_v22 }
 0x444   :  { %v534_v62 = vrot.slane %v517_v41, %v1095_v25  ;;  %v538_v4 = vrot.slane %v517_v41, %v1099_v27  ;;  %v542_v19 = vrot.slane %v517_v41, %v1103_v30  ;;  %v546_v25 = vrot.slane %v517_v41, %v1107_v32  ;;  %v32_v30 = vld [vmem:[%s1394_s3] sm:$0xff] }
 0x445   :  { %966 = vrcp.f32 %v550_v43 }
 0x446   :  { %968 = vrcp.f32 %v522_v44 }
 0x447   :  { %970 = vrcp.f32 %v526_v29 }
 0x448   :  { %972 = vrcp.f32 %v530_v50 }
 0x449   :  { %974 = vrcp.f32 %v534_v62 }
 0x44a   :  { %976 = vrcp.f32 %v538_v4 }
 0x44b   :  { %978 = vrcp.f32 %v542_v19 }
 0x44c   :  { %980 = vrcp.f32 %v546_v25 }
 0x44f   :  { %v967_v18 = vpop.eup %966 }
 0x450   :  { %v969_v1 = vpop.eup %968  ;;  %v574_v45 = vmul.f32 %v967_v18, %v441_v52 }
 0x451   :  { %v560_v34 = vmul.f32 %v969_v1, %v1234_v42  ;;  %v971_v7 = vpop.eup %970 }
 0x452   :  { %606 = vperm.xlu1 %933, %v574_v45   ;;  %v562_v23 = vmul.f32 %v971_v7, %v1241_v17  ;;  %v973_v22 = vpop.eup %972  ;;  %v33_v17 = vld [vmem:[%s1394_s3 + $0x8] sm:$0xff] }
 0x453   :  { %585 = vperm.xlu0 %932, %v560_v34   ;;  %v564_v49 = vmul.f32 %v973_v22, %v1246_v46  ;;  %v975_v8 = vpop.eup %974  ;;  %v905_v52 = vpack.c.bf16 %v33_v17, %v32_v30 }
 0x454   :  { %v566_v27 = vmul.f32 %v975_v8, %v1251_v3  ;;  %v977_v42 = vpop.eup %976  ;;  %v34_v3 = vld [vmem:[%s1394_s3 + $0x10] sm:$0xff] }
 0x455   :  { %v568_v32 = vmul.f32 %v977_v42, %v1230_v40  ;;  %v979_v46 = vpop.eup %978  ;;  %906 = vmatpush3.bf16.msra.mxu0 %v905_v52  ;;  %v908_v12 = vpack.c.bf16 %v35_v11, %v34_v3  ;;  %v36_v40 = vld [vmem:[%s1394_s3 + $0x20] sm:$0xff] }
 0x456   :  { %907 = vmatprep.subr.bf16.mxu0 %v989_v57  ;;  %v570_v56 = vmul.f32 %v979_v46, %v1256_v21  ;;  %v981_v15 = vpop.eup %980  ;;  %v911_v16 = vpack.c.bf16 %v37_v31, %v36_v40  ;;  %v38_v21 = vld [vmem:[%s1394_s3 + $0x30] sm:$0xff] }
 0x457   :  { %588 = vperm.xlu0 %932, %v562_v23   ;;  %v572_v47 = vmul.f32 %v981_v15, %v1261_v26  ;;  %v914_v48 = vpack.c.bf16 %v39_v55, %v38_v21  ;;  %v41_v26 = vld [vmem:[%s1394_s3 + $0x48] sm:$0xff] }
 0x458   :  { %v917_v51 = vpack.c.bf16 %v41_v26, %v40_v60 }
 0x459   :  { %909 = vmatpush3.bf16.msra.mxu0 %v908_v12 }
 0x45a   :  { %910 = vmatprep.subr.bf16.mxu0 %v989_v57 }
 0x45b   :  { %591 = vperm.xlu0 %932, %v564_v49  }
 0x45d   :  { %912 = vmatpush3.bf16.msra.mxu0 %v911_v16 }
 0x45e   :  { %913 = vmatprep.subr.bf16.mxu0 %v989_v57 }
 0x45f   :  { %594 = vperm.xlu0 %932, %v566_v27  }
 0x461   :  { %915 = vmatpush3.bf16.msra.mxu0 %v914_v48 }
 0x462   :  { %916 = vmatprep.subr.bf16.mxu0 %v989_v57 }
 0x463   :  { %597 = vperm.xlu0 %932, %v568_v32  }
 0x465   :  { %918 = vmatpush3.bf16.msra.mxu0 %v917_v51 }
 0x466   :  { %919 = vmatprep.subr.bf16.mxu0 %v989_v57 }
 0x467   :  { %600 = vperm.xlu0 %932, %v570_v56  }
 0x469   :  { %921 = vmatpush3.bf16.msra.mxu0 %v920_v53 }
 0x46a   :  { %922 = vmatprep.subr.bf16.mxu0 %v989_v57 }
 0x46b   :  { %603 = vperm.xlu0 %932, %v572_v47  }
 0x46d   :  { %924 = vmatpush3.bf16.msra.mxu0 %v923_v33 }
 0x46e   :  { %925 = vmatprep.subr.bf16.mxu0 %v989_v57 }
 0x471   :  { %927 = vmatpush3.bf16.msra.mxu0 %v926_v36 }
 0x4d1   :  { %v607_v50 = vpop.permute.xlu1 %606 }
 0x4d2   :  { %v586_v37 = vpop.permute.xlu0 %585  ;;  %v664_v45 = vmul.f32 %v607_v50, %v1069_v13  ;;  %v639_v59 = vrot.slane %v607_v50, %v1155_v63 }
 0x4d3   :  { %v657_v41 = vmul.f32 %v586_v37, %v1038_v2  ;;  %v611_v27 = vrot.slane %v586_v37, %v1155_v63 }
 0x4d4   :  { %v707_v25 = vrot.slane %v664_v45, 4 }
 0x4d5   :  { %v665_v18 = vrot.slane %v657_v41, 4 }
 0x4d6   :  { %v589_v38 = vpop.permute.xlu0 %588  ;;  %v708_v3 = vadd.f32 %v707_v25, %v664_v45 }
 0x4d7   :  { %v658_v39 = vmul.f32 %v589_v38, %v1050_v6  ;;  %v666_v19 = vadd.f32 %v665_v18, %v657_v41  ;;  %v615_v6 = vrot.slane %v589_v38, %v1155_v63 }
 0x4d8   :  { %v709_v54 = vrot.slane %v708_v3, 2 }
 0x4d9   :  { %v671_v29 = vrot.slane %v658_v39, 4  ;;  %v640_v57 = vsel %vm218_vm0, %v615_v6, %v611_v27 }
 0x4da   :  { %v592_v43 = vpop.permute.xlu0 %591 }
 0x4db   :  { %v659_v44 = vmul.f32 %v592_v43, %v1030_v0  ;;  %v672_v4 = vadd.f32 %v671_v29, %v658_v39  ;;  %v619_v49 = vrot.slane %v592_v43, %v1155_v63 }
 0x4dd   :  { %v677_v62 = vrot.slane %v659_v44, 4  ;;  %v673_v0 = vrot.slane %v672_v4, 2  ;;  %v641_v12 = vsel %vm220_vm1, %v619_v49, %v640_v57 }
 0x4de   :  { %v595_v1 = vpop.permute.xlu0 %594 }
 0x4df   :  { %v660_v34 = vmul.f32 %v595_v1, %v1045_v5  ;;  %v678_v7 = vadd.f32 %v677_v62, %v659_v44  ;;  %v623_v13 = vrot.slane %v595_v1, %v1155_v63  ;;  %v667_v5 = vrot.slane %v666_v19, 2 }
 0x4e0   :  { %v674_v11 = vadd.f32 %v673_v0, %v672_v4 }
 0x4e1   :  { %v683_v23 = vrot.slane %v660_v34, 4  ;;  %v679_v42 = vrot.slane %v678_v7, 2  ;;  %v642_v40 = vsel %vm222_vm2, %v623_v13, %v641_v12  ;;  %v668_v47 = vadd.f32 %v667_v5, %v666_v19 }
 0x4e2   :  { %v598_v22 = vpop.permute.xlu0 %597  ;;  %v675_v53 = vrot.slane %v674_v11, 1 }
 0x4e3   :  { %v661_v2 = vmul.f32 %v598_v22, %v1062_v10  ;;  %v684_v8 = vadd.f32 %v683_v23, %v660_v34  ;;  %v627_v52 = vrot.slane %v598_v22, %v1155_v63  ;;  %v680_v15 = vadd.f32 %v679_v42, %v678_v7 }
 0x4e4   :  { %v669_v35 = vrot.slane %v668_v47, 1 }
 0x4e5   :  { %v689_v30 = vrot.slane %v661_v2, 4  ;;  %v685_v17 = vrot.slane %v684_v8, 2  ;;  %v643_v55 = vsel %vm224_vm3, %v627_v52, %v642_v40  ;;  %v681_v24 = vrot.slane %v680_v15, 1 }
 0x4e6   :  { %v601_v32 = vpop.permute.xlu0 %600  ;;  %v670_v50 = vadd.f32 %v669_v35, %v668_v47 }
 0x4e7   :  { %v690_v46 = vadd.f32 %v689_v30, %v661_v2  ;;  %v662_v10 = vmul.f32 %v601_v32, %v1057_v9  ;;  %v631_v56 = vrot.slane %v601_v32, %v1155_v63  ;;  %v686_v21 = vadd.f32 %v685_v17, %v684_v8  ;;  %v851_v8 = vld [vmem:[%s1396_s4] ss:$0 sm:$0xff] }
 0x4e8   :  { %v682_v43 = vadd.f32 %v681_v24, %v680_v15 }
 0x4e9   :  { %v691_v31 = vrot.slane %v690_v46, 2  ;;  %v695_v16 = vrot.slane %v662_v10, 4  ;;  %v644_v20 = vsel %vm226_vm4, %v631_v56, %v643_v55  ;;  %v687_v36 = vrot.slane %v686_v21, 1 }
 0x4ea   :  { %v604_v48 = vpop.permute.xlu0 %603 }
 0x4eb   :  { %v692_v60 = vadd.f32 %v691_v31, %v690_v46  ;;  %v696_v26 = vadd.f32 %v695_v16, %v662_v10  ;;  %v635_v9 = vrot.slane %v604_v48, %v1155_v63  ;;  %v663_v51 = vmul.f32 %v604_v48, %v1074_v14 }
 0x4ec   :  { %v710_v14 = vadd.f32 %v709_v54, %v708_v3  ;;  %v676_v63 = vadd.f32 %v675_v53, %v674_v11  ;;  %v688_v62 = vadd.f32 %v687_v36, %v686_v21 }
 0x4ed   :  { %v697_v58 = vrot.slane %v696_v26, 2  ;;  %v645_v28 = vsel %vm228_vm5, %v635_v9, %v644_v20  ;;  %v701_v33 = vrot.slane %v663_v51, 4  ;;  %v693_v38 = vrot.slane %v692_v60, 1 }
 0x4ee   :  { %v646_v37 = vsel %vm230_vm6, %v639_v59, %v645_v28  ;;  %v711_v45 = vrot.slane %v710_v14, 1  ;;  %v727_v4 = vsel %vm218_vm0, %v676_v63, %v670_v50 }
 0x4ef   :  { %v698_v39 = vadd.f32 %v697_v58, %v696_v26  ;;  %v702_v41 = vadd.f32 %v701_v33, %v663_v51  ;;  %648 = vst.msk [vmem:[%s1395_s5] sm:$0xff] %vm233_vm7, %v646_v37  ;;  %v694_v18 = vadd.f32 %v693_v38, %v692_v60  ;;  %v728_v7 = vsel %vm220_vm1, %v682_v43, %v727_v4 }
 0x4f0   :  { %v729_v23 = vsel %vm222_vm2, %v688_v62, %v728_v7  ;;  %v712_v2 = vadd.f32 %v711_v45, %v710_v14 }
 0x4f1   :  { %v699_v44 = vrot.slane %v698_v39, 1  ;;  %v703_v29 = vrot.slane %v702_v41, 2  ;;  %v730_v6 = vsel %vm224_vm3, %v694_v18, %v729_v23 }
 0x4f3   :  { %v704_v1 = vadd.f32 %v703_v29, %v702_v41  ;;  %v700_v34 = vadd.f32 %v699_v44, %v698_v39 }
 0x4f5   :  { %v705_v19 = vrot.slane %v704_v1, 1  ;;  %v731_v25 = vsel %vm226_vm4, %v700_v34, %v730_v6 }
 0x4f7   :  { %v706_v22 = vadd.f32 %v705_v19, %v704_v1 }
 0x4f9   :  { %v732_v0 = vsel %vm228_vm5, %v706_v22, %v731_v25 }
 0x4fa   :  { %v733_v49 = vsel %vm230_vm6, %v712_v2, %v732_v0 }
 0x4fb   :  { %902 = vmatmul.mubr.f32.vlgmr.msra.gmra.mrb[0].mxu0 %v733_v49 }
 0x5ce   :  { %v801_v27 = vpop.f32.mrb[0].mxu0 }
 0x5cf   :  { %v802_v42 = vadd.f32 %v851_v8, %v801_v27  ;;  %v903_v13 = vpop.f32.mrb[1].mxu0 }
 0x5d1   :  { %805 = vmax.xlane.f32.xlu0 %v802_v42 }
 0x65e   :  { %v806_v30 = vpop.xlane.xlu0 %805 }
 0x65f   :  { %vm807_vm9 = vcmp.eq.f32.partialorder %v802_v42, %v806_v30  ;;  %v824_v5 = vsub.f32 %v802_v42, %v806_v30 }
 0x660   :  { %v808_v17 = vsel %vm807_vm9, %v1151_v61, 128 }
 0x661   :  { %v825_v52 = vmul.f32 1.442695, %v824_v5  ;;  %v810_v32 = vshra.s32 %v808_v17, 16  ;;  %v809_v10 = vand.u32 65535, %v808_v17 }
 0x663   :  { %982 = vpow2.f32 %v825_v52  ;;  %v812_v57 = vcvt.s32.f32 %v810_v32  ;;  %v811_v11 = vcvt.s32.f32 %v809_v10 }
 0x665   :  { %813 = vmin.xlane.f32.xlu0 %v812_v57 }
 0x66d   :  { %v983_v46 = vpop.eup %982 }
 0x66e   :  { %827 = vadd.xlane.f32.xlu1 %v983_v46 }
 0x6f2   :  { %v814_v3 = vpop.xlane.xlu0 %813 }
 0x6f3   :  { %vm815_vm10 = vcmp.eq.f32.partialorder %v812_v57, %v814_v3  ;;  %v820_v47 = vcvt.f32.s32 %v814_v3 }
 0x6f4   :  { %v816_v12 = vsel %vm815_vm10, %v811_v11, inf }
 0x6f5   :  { %817 = vmin.xlane.f32.xlu0 %v816_v12  ;;  %v821_v48 = vshll.u32 %v820_v47, 16 }
 0x6fb   :  { %v828_v56 = vpop.xlane.xlu1 %827 }
 0x6fc   :  { %984 = vrcp.f32 %v828_v56 }
 0x6fd   :  { %986 = vlog2.f32 %v828_v56 }
 0x706   :  { %v985_v15 = vpop.eup %984 }
 0x707   :  { %v830_v40 = vmul.f32 %v985_v15, %v983_v46  ;;  %v987_v55 = vpop.eup %986 }
 0x708   :  { %v832_v26 = vmul.f32 0.6931472, %v987_v55 }
 0x709   :  { %v833_v31 = vmul.f32 %v830_v40, %v824_v5 }
 0x70b   :  { %834 = vadd.xlane.f32.xlu0 %v833_v31 }
 0x782   :  { %v818_v16 = vpop.xlane.xlu0 %817 }
 0x783   :  { %v819_v21 = vcvt.f32.s32 %v818_v16 }
 0x785   :  { %v822_v60 = vadd.s32 %v821_v48, %v819_v21 }
 0x787   :  { %v823_v59 = vcvt.s32.f32 %v822_v60 }
 0x798   :  { %v835_v9 = vpop.xlane.xlu0 %834 }
 0x799   :  { %v836_v51 = vsub.f32 %v832_v26, %v835_v9 }
 0x79b   :  { %v839_v54 = vsel %vm838_vm11, %v836_v51, %v830_v40 }
 0x79c   :  { %v840_v53 = vsel %vm837_vm12, %v823_v59, %v839_v54 }
 0x79d   :  { %841 = vst [vmem:[%s1397_s6] sm:$0xff] %v840_v53 }

</bundles_post_ra>
